<compile_context>
chip_gen: v7x
topology: tpu7x:2x2x1
jax: 0.10.0
libtpu: 0.0.40
codegen_flags: <defaults>
</compile_context>

<pallas_src>
import functools
import math

import jax
import jax.numpy as jnp
from jax.experimental import pallas as pl
from jax.experimental.pallas import tpu as pltpu


def _round_up(v, m):
    return ((v + m - 1) // m) * m


def _pick_tile(total, max_tile):
    """Largest multiple of 128 that divides `total` (a multiple of 128) and is <= max_tile."""
    best = 128
    t = 128
    limit = min(total, max_tile)
    while t <= limit:
        if total % t == 0:
            best = t
        t += 128
    return best


def _vmem_budget_bytes():
    """Per-generation usable-VMEM budget (conservative fallback: v7x, 64 MiB)."""
    phys = 64 * 1024 * 1024
    try:
        info = pltpu.get_tpu_info()
        cap = getattr(info, "vmem_capacity_bytes", None)
        if cap:
            phys = int(cap)
    except Exception:
        pass
    # Leave headroom for compiler scratch; ~51 MiB on v7x, capped at ~100 MiB
    # on the 128-MiB parts (v5e / v6e).
    return min(int(phys * 0.8), 100 * 1024 * 1024)


# ---------------------------------------------------------------------------
# Stage 1: support = X @ W  (row-tiled prologue, runs once, bf16 output)
# ---------------------------------------------------------------------------
def _support_kernel(x_ref, w_ref, sup_ref):
    # f32 x f32 with f32 accumulation (stage 1 is tiny vs stage 2); cast to
    # bf16 on store so stage 2 runs the single-pass bf16 MXU path.
    sup_ref[...] = jnp.dot(
        x_ref[...], w_ref[...], preferred_element_type=jnp.float32
    ).astype(sup_ref.dtype)


# ---------------------------------------------------------------------------
# Stage 2: out = adj @ support + bias  (tiled over (row tiles, k tiles))
# ---------------------------------------------------------------------------
def _make_spmm_kernel(t_k, resident_support):
    def kernel(adj_ref, sup_ref, b_ref, out_ref):
        k = pl.program_id(1)

        @pl.when(k == 0)
        def _init():
            # Output block is resident across k: seed it with the bias so both
            # the epilogue bias add and the accumulator->output copy vanish.
            out_ref[...] = jnp.broadcast_to(b_ref[...], out_ref.shape)

        if resident_support:
            row0 = pl.multiple_of(k * t_k, 128)
            sup_blk = sup_ref[pl.ds(row0, t_k), :]
        else:
            sup_blk = sup_ref[...]

        # bf16 x bf16 -> f32: native MXU path, f32 accumulation directly into
        # the resident f32 output block.
        out_ref[...] += jnp.dot(
            adj_ref[...], sup_blk, preferred_element_type=jnp.float32
        )

    return kernel


@functools.partial(
    jax.jit, static_argnames=("tile_m", "tile_k", "force_stream_support")
)
def graph_convolution(x, weight, adj, bias, *, tile_m=512, tile_k=1024,
                      force_stream_support=False):
    """x: (N, F_in), weight: (F_in, F_out), adj: (N, N), bias: (F_out,)."""
    N, f_in = x.shape
    f_out = weight.shape[1]

    # Lane-dense padded sizes (only ragged edges are padded).
    f_in_p = _round_up(f_in, 128)
    f_out_p = _round_up(f_out, 128)
    n_p = _round_up(N, 128)

    # ---- tile selection (divisors of n_p -> no extra zero padding streamed) ----
    t_k = _pick_tile(n_p, tile_k)            # adj column (reduction) tile
    t_m = _pick_tile(n_p, tile_m)            # adj / output row tile
    if n_p // t_m < 2 and n_p > 128:
        # Guarantee >=2 row tiles so both TensorCores on v7x get work.
        t_m = _pick_tile(n_p, n_p // 2)

    # ---- pads (ragged edges only; zeros contribute nothing to either matmul) ----
    pad_n = n_p - N
    x_p = x.astype(jnp.float32)
    if pad_n or f_in_p != f_in:
        x_p = jnp.pad(x_p, ((0, pad_n), (0, f_in_p - f_in)))
    w_p = weight.astype(jnp.float32)
    if f_in_p != f_in or f_out_p != f_out:
        w_p = jnp.pad(w_p, ((0, f_in_p - f_in), (0, f_out_p - f_out)))
    b_p = bias.astype(jnp.float32).reshape(1, f_out)
    if f_out_p != f_out:
        b_p = jnp.pad(b_p, ((0, 0), (0, f_out_p - f_out)))
    # 0/1 adjacency is exact in bf16 -> halves the dominant HBM stream; an
    # already-bf16 adj is accepted without a cast pass.
    adj_b = adj if adj.dtype == jnp.bfloat16 else adj.astype(jnp.bfloat16)
    if pad_n:
        adj_b = jnp.pad(adj_b, ((0, pad_n), (0, pad_n)))

    # ---- Stage 1: support = X @ W (hoisted out of the adj reduction) ----
    t1 = _pick_tile(n_p, 512)
    support = pl.pallas_call(
        _support_kernel,
        out_shape=jax.ShapeDtypeStruct((n_p, f_out_p), jnp.bfloat16),
        grid_spec=pltpu.PrefetchScalarGridSpec(
            num_scalar_prefetch=0,
            grid=(n_p // t1,),
            in_specs=[
                pl.BlockSpec((t1, f_in_p), lambda i: (i, 0)),
                pl.BlockSpec((f_in_p, f_out_p), lambda i: (0, 0)),
            ],
            out_specs=pl.BlockSpec((t1, f_out_p), lambda i: (i, 0)),
        ),
        compiler_params=pltpu.CompilerParams(
            dimension_semantics=("parallel",),
        ),
    )(x_p, w_p)

    # ---- Stage 2: out = adj @ support + bias ----
    budget = _vmem_budget_bytes()
    # Honest accounting: the constant-index support block is double-buffered
    # by the pipeline, so its real residency is 2x its size.
    sup_resident_bytes = 2 * n_p * f_out_p * 2
    resident = (not force_stream_support) and (sup_resident_bytes <= budget // 2)

    n_row_tiles = n_p // t_m
    n_k_tiles = n_p // t_k

    if resident:
        sup_spec = pl.BlockSpec((n_p, f_out_p), lambda i, k: (0, 0))
        sup_hbm_bytes = n_p * f_out_p * 2
        sup_vmem_bytes = sup_resident_bytes
    else:
        # Streamed fallback for graphs whose support does not fit in VMEM:
        # re-fetches support once per row tile (~small vs the adj stream).
        sup_spec = pl.BlockSpec((t_k, f_out_p), lambda i, k: (k, 0))
        sup_hbm_bytes = n_row_tiles * n_p * f_out_p * 2
        sup_vmem_bytes = 2 * t_k * f_out_p * 2

    vmem_need = (
        2 * t_m * t_k * 2          # double-buffered bf16 adj tiles
        + sup_vmem_bytes           # support (resident or streamed)
        + 2 * t_m * f_out_p * 4    # double-buffered resident f32 output block
        + 2 * 8 * f_out_p * 4      # bias (sublane-padded)
    )
    vmem_limit = int(min(budget, max(32 * 1024 * 1024, int(1.5 * vmem_need))))

    cost = pl.CostEstimate(
        flops=2 * n_p * n_p * f_out_p,
        transcendentals=0,
        bytes_accessed=int(
            n_p * n_p * 2            # adj (bf16) — dominant stream
            + sup_hbm_bytes          # support
            + n_p * f_out_p * 4      # output
        ),
    )

    out_p = pl.pallas_call(
        _make_spmm_kernel(t_k, resident),
        out_shape=jax.ShapeDtypeStruct((n_p, f_out_p), jnp.float32),
        grid_spec=pltpu.PrefetchScalarGridSpec(
            num_scalar_prefetch=0,
            grid=(n_row_tiles, n_k_tiles),
            in_specs=[
                pl.BlockSpec((t_m, t_k), lambda i, k: (i, k)),    # adj tile (bf16)
                sup_spec,                                         # support (bf16)
                pl.BlockSpec((1, f_out_p), lambda i, k: (0, 0)),  # bias
            ],
            out_specs=pl.BlockSpec((t_m, f_out_p), lambda i, k: (i, 0)),
        ),
        compiler_params=pltpu.CompilerParams(
            dimension_semantics=("parallel", "arbitrary"),
            vmem_limit_bytes=vmem_limit,
        ),
        cost_estimate=cost,
    )(adj_b, support, b_p)

    return out_p[:N, :f_out]


if __name__ == "__main__":
    # Small shapes consistent with the module: N nodes, in_features -> out_features.
    # N deliberately NOT a multiple of 128 to exercise the padding path.
    N, F_IN, F_OUT = 300, 64, 32

    key = jax.random.PRNGKey(0)
    k_x, k_adj, k_w, k_b = jax.random.split(key, 4)

    x = jax.random.normal(k_x, (N, F_IN), dtype=jnp.float32)
    adj_raw = jax.random.uniform(k_adj, (N, N), dtype=jnp.float32)
    adj = (adj_raw > 0.9).astype(jnp.float32)  # sparse-ish dense 0/1 adjacency

    # Parameter init mirroring reset_parameters(): U(-stdv, stdv), stdv = 1/sqrt(out_features).
    stdv = 1.0 / math.sqrt(F_OUT)
    weight = jax.random.uniform(
        k_w, (F_IN, F_OUT), dtype=jnp.float32, minval=-stdv, maxval=stdv
    )
    bias = jax.random.uniform(
        k_b, (F_OUT,), dtype=jnp.float32, minval=-stdv, maxval=stdv
    )

    # Default path: resident bf16 support, rectangular adj tiles.
    out = jax.block_until_ready(graph_convolution(x, weight, adj, bias))
    # Streamed-support fallback: also exercises multi-k accumulation.
    out_stream = jax.block_until_ready(
        graph_convolution(x, weight, adj, bias,
                          tile_m=128, tile_k=128, force_stream_support=True)
    )

    # References.  Kernel arithmetic = bf16-rounded support, f32 accumulation,
    # exact bf16 adjacency; ref_exact mirrors that, ref_f32 is the pure-f32
    # module reference (differs only by the bf16 rounding of support).
    support = jnp.dot(x, weight, precision=jax.lax.Precision.HIGHEST)
    support_bf16 = support.astype(jnp.bfloat16).astype(jnp.float32)
    ref_exact = jnp.dot(adj, support_bf16,
                        precision=jax.lax.Precision.HIGHEST) + bias
    ref_f32 = jnp.dot(adj, support, precision=jax.lax.Precision.HIGHEST) + bias

    assert out.shape == (N, F_OUT)
    assert jnp.allclose(out, ref_exact, atol=2e-3, rtol=2e-3), \
        "resident path mismatch vs bf16-support reference"
    assert jnp.allclose(out_stream, ref_exact, atol=2e-3, rtol=2e-3), \
        "streamed path mismatch vs bf16-support reference"
    assert jnp.allclose(out, ref_f32, atol=1e-1, rtol=5e-2), \
        "mismatch vs f32 module reference"

    print("KERNEL_OK")
</pallas_src>

<mosaic_0001>
module attributes {stable_mosaic.version = 11 : i64} {
  func.func @kernel(%arg0: i32, %arg1: i32, %arg2: memref<128x384xbf16, #tpu.memory_space<vmem>>, %arg3: memref<384x128xbf16, #tpu.memory_space<vmem>>, %arg4: memref<1x128xf32, #tpu.memory_space<vmem>>, %arg5: memref<128x128xf32, #tpu.memory_space<vmem>>) attributes {dimension_semantics = [#tpu.dimension_semantics<parallel>, #tpu.dimension_semantics<arbitrary>], iteration_bounds = array<i64: 3, 1>, scalar_prefetch = 0 : i64, scratch_operands = 0 : i64, tpu.core_type = #tpu.core_type<tc>, window_params = [{transform_indices = @transform_0, window_bounds = array<i64: 128, 384>}, {pipeline_mode = #tpu.pipeline_mode<synchronous>, transform_indices = @transform_1, window_bounds = array<i64: 384, 128>}, {pipeline_mode = #tpu.pipeline_mode<synchronous>, transform_indices = @transform_2, window_bounds = array<i64: 1, 128>}, {transform_indices = @transform_3, window_bounds = array<i64: 128, 128>}]} {
    %c0_i32 = arith.constant 0 : i32
    %0 = arith.cmpi eq, %arg1, %c0_i32 : i32
    %1 = arith.extui %0 : i1 to i32
    %c0_i32_0 = arith.constant 0 : i32
    %2 = arith.cmpi ne, %1, %c0_i32_0 : i32
    scf.if %2 {
      %c0_7 = arith.constant 0 : index
      %c0_8 = arith.constant 0 : index
      %12 = vector.load %arg4[%c0_7, %c0_8] : memref<1x128xf32, #tpu.memory_space<vmem>>, vector<1x128xf32>
      %13 = vector.shape_cast %12 : vector<1x128xf32> to vector<1x128xf32>
      %14 = vector.broadcast %13 : vector<1x128xf32> to vector<128x128xf32>
      %c0_9 = arith.constant 0 : index
      %c0_10 = arith.constant 0 : index
      %15 = vector.load %arg5[%c0_9, %c0_10] : memref<128x128xf32, #tpu.memory_space<vmem>>, vector<128x128xf32>
      tpu.vector_store %arg5[%c0_9, %c0_10], %14 {strides = array<i32>} : memref<128x128xf32, #tpu.memory_space<vmem>>, vector<128x128xf32>,
    } else {
    }
    %c384_i32 = arith.constant 384 : i32
    %3 = arith.muli %arg1, %c384_i32 : i32
    %4 = tpu.assume_multiple %3, 128 : i32
    %5 = arith.index_cast %4 : i32 to index
    %c0 = arith.constant 0 : index
    %6 = vector.load %arg3[%5, %c0] : memref<384x128xbf16, #tpu.memory_space<vmem>>, vector<384x128xbf16>
    %c0_1 = arith.constant 0 : index
    %c0_2 = arith.constant 0 : index
    %7 = vector.load %arg5[%c0_1, %c0_2] : memref<128x128xf32, #tpu.memory_space<vmem>>, vector<128x128xf32>
    %c0_3 = arith.constant 0 : index
    %c0_4 = arith.constant 0 : index
    %8 = vector.load %arg2[%c0_3, %c0_4] : memref<128x384xbf16, #tpu.memory_space<vmem>>, vector<128x384xbf16>
    %cst = arith.constant dense<0.000000e+00> : vector<128x128xf32>
    %9 = tpu.matmul %8, %6, %cst {dimension_numbers = #tpu.dot_dimension_numbers<[1], [0], [0], [1], [0, 0, 1, 1], [], []>} : vector<128x384xbf16>, vector<384x128xbf16>, vector<128x128xf32> -> vector<128x128xf32>
    %10 = arith.addf %7, %9 : vector<128x128xf32>
    %c0_5 = arith.constant 0 : index
    %c0_6 = arith.constant 0 : index
    %11 = vector.load %arg5[%c0_5, %c0_6] : memref<128x128xf32, #tpu.memory_space<vmem>>, vector<128x128xf32>
    tpu.vector_store %arg5[%c0_5, %c0_6], %10 {strides = array<i32>} : memref<128x128xf32, #tpu.memory_space<vmem>>, vector<128x128xf32>,
    return
  }
  func.func @transform_0(%arg0: i32, %arg1: i32) -> (i32, i32) {
    %c0_i32 = arith.constant 0 : i32
    return %arg0, %arg1 : i32, i32
  }
  func.func @transform_1(%arg0: i32, %arg1: i32) -> (i32, i32) {
    %c0_i32 = arith.constant 0 : i32
    %c0_i32_0 = arith.constant 0 : i32
    %c0_i32_1 = arith.constant 0 : i32
    return %c0_i32, %c0_i32_0 : i32, i32
  }
  func.func @transform_2(%arg0: i32, %arg1: i32) -> (i32, i32) {
    %c0_i32 = arith.constant 0 : i32
    %c0_i32_0 = arith.constant 0 : i32
    %c0_i32_1 = arith.constant 0 : i32
    return %c0_i32, %c0_i32_0 : i32, i32
  }
  func.func @transform_3(%arg0: i32, %arg1: i32) -> (i32, i32) {
    %c0_i32 = arith.constant 0 : i32
    %c0_i32_0 = arith.constant 0 : i32
    return %arg0, %c0_i32 : i32, i32
  }
}

module attributes {stable_mosaic.version = 11 : i64} {
  func.func @_support_kernel(%arg0: i32, %arg1: memref<384x128xf32, #tpu.memory_space<vmem>>, %arg2: memref<128x128xf32, #tpu.memory_space<vmem>>, %arg3: memref<384x128xbf16, #tpu.memory_space<vmem>>) attributes {dimension_semantics = [#tpu.dimension_semantics<parallel>], iteration_bounds = array<i64: 1>, scalar_prefetch = 0 : i64, scratch_operands = 0 : i64, tpu.core_type = #tpu.core_type<tc>, window_params = [{transform_indices = @transform_0, window_bounds = array<i64: 384, 128>}, {pipeline_mode = #tpu.pipeline_mode<synchronous>, transform_indices = @transform_1, window_bounds = array<i64: 128, 128>}, {transform_indices = @transform_2, window_bounds = array<i64: 384, 128>}]} {
    %c0 = arith.constant 0 : index
    %c0_0 = arith.constant 0 : index
    %0 = vector.load %arg1[%c0, %c0_0] : memref<384x128xf32, #tpu.memory_space<vmem>>, vector<384x128xf32>
    %c0_1 = arith.constant 0 : index
    %c0_2 = arith.constant 0 : index
    %1 = vector.load %arg2[%c0_1, %c0_2] : memref<128x128xf32, #tpu.memory_space<vmem>>, vector<128x128xf32>
    %cst = arith.constant dense<0.000000e+00> : vector<384x128xf32>
    %2 = tpu.matmul %0, %1, %cst {dimension_numbers = #tpu.dot_dimension_numbers<[1], [0], [0], [1], [0, 0, 1, 1], [], []>} : vector<384x128xf32>, vector<128x128xf32>, vector<384x128xf32> -> vector<384x128xf32>
    %3 = arith.truncf %2 : vector<384x128xf32> to vector<384x128xbf16>
    %c0_3 = arith.constant 0 : index
    %c0_4 = arith.constant 0 : index
    %4 = vector.load %arg3[%c0_3, %c0_4] : memref<384x128xbf16, #tpu.memory_space<vmem>>, vector<384x128xbf16>
    tpu.vector_store %arg3[%c0_3, %c0_4], %3 {strides = array<i32>} : memref<384x128xbf16, #tpu.memory_space<vmem>>, vector<384x128xbf16>,
    return
  }
  func.func @transform_0(%arg0: i32) -> (i32, i32) {
    %c0_i32 = arith.constant 0 : i32
    %c0_i32_0 = arith.constant 0 : i32
    return %arg0, %c0_i32 : i32, i32
  }
  func.func @transform_1(%arg0: i32) -> (i32, i32) {
    %c0_i32 = arith.constant 0 : i32
    %c0_i32_0 = arith.constant 0 : i32
    %c0_i32_1 = arith.constant 0 : i32
    return %c0_i32, %c0_i32_0 : i32, i32
  }
  func.func @transform_2(%arg0: i32) -> (i32, i32) {
    %c0_i32 = arith.constant 0 : i32
    %c0_i32_0 = arith.constant 0 : i32
    return %arg0, %c0_i32 : i32, i32
  }
}

</mosaic_0001>

<bundles_post_ra>
// kernel: graph_convolution.2
= control target key start
LH: loop header
LB: loop body
LE: loop exit
PB: predicated region body
PF: predicated region fallthrough
CT: control target
= control target key end

     0   :  { %s1358_s1 = inlined_call_operand.vmem [shape: f32[128,128], index: 1, kind: input, shape index: {}]   ;;  %s1359_s0 = inlined_call_operand.vmem [shape: f32[384,128], index: 0, kind: input, shape index: {}]   ;;  %s1360_s2 = inlined_call_operand.vmem [shape: bf16[384,128], index: 2, kind: output, shape index: {}]  }
   0x1   :  { %v59_v0 = vld [vmem:[%s1358_s1] sm:$0xff]  ;;  %v60_v1 = vld [vmem:[%s1358_s1 + $0x8] sm:$0xff]  ;;  %v61_v2 = vld [vmem:[%s1358_s1 + $0x10] sm:$0xff] }
   0x2   :  { %v1031_v3 = vpack.c.bf16 %v60_v1, %v59_v0  ;;  %v62_v4 = vld [vmem:[%s1358_s1 + $0x18] sm:$0xff]  ;;  %v63_v6 = vld [vmem:[%s1358_s1 + $0x20] sm:$0xff]  ;;  %v64_v7 = vld [vmem:[%s1358_s1 + $0x28] sm:$0xff] }
   0x3   :  { %v1035_v5 = vpack.c.bf16 %v62_v4, %v61_v2  ;;  %v1039_v8 = vpack.c.bf16 %v64_v7, %v63_v6  ;;  %v11_v9 = vld [vmem:[%s1359_s0] sm:$0xff]  ;;  %v65_v11 = vld [vmem:[%s1358_s1 + $0x30] sm:$0xff]  ;;  %v66_v12 = vld [vmem:[%s1358_s1 + $0x38] sm:$0xff] }
   0x4   :  { %1032 = vmatprep.subr.bf16.mxu0 %v1031_v3  ;;  %1063 = vmatprep.subr.bf16.mxu1 %v1031_v3  ;;  %v35_v10 = vld [vmem:[%s1359_s0 + $0xc0] sm:$0xff]  ;;  %v1043_v13 = vpack.c.bf16 %v66_v12, %v65_v11  ;;  %v68_v15 = vld [vmem:[%s1358_s1 + $0x48] sm:$0xff]  ;;  %v69_v17 = vld [vmem:[%s1358_s1 + $0x50] sm:$0xff] }
   0x5   :  { %1034 = vmatpush3.bf16.msra.mxu0 %v1031_v3  ;;  %1071 = vmatpush3.bf16.msra.mxu1 %v1031_v3  ;;  %v67_v14 = vld [vmem:[%s1358_s1 + $0x40] sm:$0xff]  ;;  %v70_v18 = vld [vmem:[%s1358_s1 + $0x58] sm:$0xff]  ;;  %v72_v21 = vld [vmem:[%s1358_s1 + $0x68] sm:$0xff] }
   0x6   :  { %1036 = vmatprep.subr.bf16.mxu0 %v1035_v5  ;;  %1064 = vmatprep.subr.bf16.mxu1 %v1035_v5  ;;  %v1047_v16 = vpack.c.bf16 %v68_v15, %v67_v14  ;;  %v1051_v19 = vpack.c.bf16 %v70_v18, %v69_v17  ;;  %v71_v20 = vld [vmem:[%s1358_s1 + $0x60] sm:$0xff]  ;;  %v73_v23 = vld [vmem:[%s1358_s1 + $0x70] sm:$0xff]  ;;  %v74_v24 = vld [vmem:[%s1358_s1 + $0x78] sm:$0xff] }
   0x7   :  { %959 = vmatprep.mubr.f32.mxu0 %v11_v9  ;;  %995 = vmatprep.mubr.f32.mxu1 %v35_v10  ;;  %v1055_v22 = vpack.c.bf16 %v72_v21, %v71_v20  ;;  %v1059_v25 = vpack.c.bf16 %v74_v24, %v73_v23  ;;  %v12_v26 = vld [vmem:[%s1359_s0 + $0x8] sm:$0xff]  ;;  %v13_v28 = vld [vmem:[%s1359_s0 + $0x10] sm:$0xff]  ;;  %v14_v30 = vld [vmem:[%s1359_s0 + $0x18] sm:$0xff] }
   0x8   :  { %v36_v27 = vld [vmem:[%s1359_s0 + $0xc8] sm:$0xff]  ;;  %v37_v29 = vld [vmem:[%s1359_s0 + $0xd0] sm:$0xff]  ;;  %v38_v31 = vld [vmem:[%s1359_s0 + $0xd8] sm:$0xff] }
   0x9   :  { %1038 = vmatpush3.bf16.msra.mxu0 %v1035_v5  ;;  %1072 = vmatpush3.bf16.msra.mxu1 %v1035_v5  ;;  %v15_v32 = vld [vmem:[%s1359_s0 + $0x20] sm:$0xff]  ;;  %v16_v34 = vld [vmem:[%s1359_s0 + $0x28] sm:$0xff]  ;;  %v17_v36 = vld [vmem:[%s1359_s0 + $0x30] sm:$0xff] }
   0xa   :  { %1040 = vmatprep.subr.bf16.mxu0 %v1039_v8  ;;  %1065 = vmatprep.subr.bf16.mxu1 %v1039_v8  ;;  %v39_v33 = vld [vmem:[%s1359_s0 + $0xe0] sm:$0xff]  ;;  %v40_v35 = vld [vmem:[%s1359_s0 + $0xe8] sm:$0xff]  ;;  %v41_v37 = vld [vmem:[%s1359_s0 + $0xf0] sm:$0xff] }
   0xb   :  { %v18_v38 = vld [vmem:[%s1359_s0 + $0x38] sm:$0xff]  ;;  %v19_v40 = vld [vmem:[%s1359_s0 + $0x40] sm:$0xff]  ;;  %v20_v42 = vld [vmem:[%s1359_s0 + $0x48] sm:$0xff] }
   0xc   :  { %v42_v39 = vld [vmem:[%s1359_s0 + $0xf8] sm:$0xff]  ;;  %v43_v41 = vld [vmem:[%s1359_s0 + $0x100] sm:$0xff]  ;;  %v44_v43 = vld [vmem:[%s1359_s0 + $0x108] sm:$0xff] }
   0xd   :  { %1042 = vmatpush3.bf16.msra.mxu0 %v1039_v8  ;;  %1073 = vmatpush3.bf16.msra.mxu1 %v1039_v8  ;;  %v21_v44 = vld [vmem:[%s1359_s0 + $0x50] sm:$0xff]  ;;  %v22_v46 = vld [vmem:[%s1359_s0 + $0x58] sm:$0xff]  ;;  %v23_v48 = vld [vmem:[%s1359_s0 + $0x60] sm:$0xff] }
   0xe   :  { %1044 = vmatprep.subr.bf16.mxu0 %v1043_v13  ;;  %1066 = vmatprep.subr.bf16.mxu1 %v1043_v13  ;;  %v45_v45 = vld [vmem:[%s1359_s0 + $0x110] sm:$0xff]  ;;  %v46_v47 = vld [vmem:[%s1359_s0 + $0x118] sm:$0xff]  ;;  %v47_v49 = vld [vmem:[%s1359_s0 + $0x120] sm:$0xff] }
   0xf   :  { %v24_v50 = vld [vmem:[%s1359_s0 + $0x68] sm:$0xff]  ;;  %v25_v52 = vld [vmem:[%s1359_s0 + $0x70] sm:$0xff]  ;;  %v26_v54 = vld [vmem:[%s1359_s0 + $0x78] sm:$0xff] }
  0x10   :  { %v48_v51 = vld [vmem:[%s1359_s0 + $0x128] sm:$0xff]  ;;  %v49_v53 = vld [vmem:[%s1359_s0 + $0x130] sm:$0xff]  ;;  %v50_v55 = vld [vmem:[%s1359_s0 + $0x138] sm:$0xff] }
  0x11   :  { %1046 = vmatpush3.bf16.msra.mxu0 %v1043_v13  ;;  %1074 = vmatpush3.bf16.msra.mxu1 %v1043_v13  ;;  %v27_v56 = vld [vmem:[%s1359_s0 + $0x80] sm:$0xff]  ;;  %v28_v58 = vld [vmem:[%s1359_s0 + $0x88] sm:$0xff]  ;;  %v29_v60 = vld [vmem:[%s1359_s0 + $0x90] sm:$0xff] }
  0x12   :  { %1048 = vmatprep.subr.bf16.mxu0 %v1047_v16  ;;  %1067 = vmatprep.subr.bf16.mxu1 %v1047_v16  ;;  %v51_v57 = vld [vmem:[%s1359_s0 + $0x140] sm:$0xff]  ;;  %v52_v59 = vld [vmem:[%s1359_s0 + $0x148] sm:$0xff]  ;;  %v53_v61 = vld [vmem:[%s1359_s0 + $0x150] sm:$0xff] }
  0x13   :  { %v30_v62 = vld [vmem:[%s1359_s0 + $0x98] sm:$0xff]  ;;  %v31_v0 = vld [vmem:[%s1359_s0 + $0xa0] sm:$0xff]  ;;  %v32_v2 = vld [vmem:[%s1359_s0 + $0xa8] sm:$0xff] }
  0x14   :  { %v54_v63 = vld [vmem:[%s1359_s0 + $0x158] sm:$0xff]  ;;  %v55_v1 = vld [vmem:[%s1359_s0 + $0x160] sm:$0xff]  ;;  %v56_v3 = vld [vmem:[%s1359_s0 + $0x168] sm:$0xff] }
  0x15   :  { %1050 = vmatpush3.bf16.msra.mxu0 %v1047_v16  ;;  %1075 = vmatpush3.bf16.msra.mxu1 %v1047_v16  ;;  %v33_v4 = vld [vmem:[%s1359_s0 + $0xb0] sm:$0xff]  ;;  %v34_v6 = vld [vmem:[%s1359_s0 + $0xb8] sm:$0xff] }
  0x16   :  { %1052 = vmatprep.subr.bf16.mxu0 %v1051_v19  ;;  %1068 = vmatprep.subr.bf16.mxu1 %v1051_v19  ;;  %v57_v5 = vld [vmem:[%s1359_s0 + $0x170] sm:$0xff]  ;;  %v58_v7 = vld [vmem:[%s1359_s0 + $0x178] sm:$0xff] }
  0x19   :  { %1054 = vmatpush3.bf16.msra.mxu0 %v1051_v19  ;;  %1076 = vmatpush3.bf16.msra.mxu1 %v1051_v19 }
  0x1a   :  { %1056 = vmatprep.subr.bf16.mxu0 %v1055_v22  ;;  %1069 = vmatprep.subr.bf16.mxu1 %v1055_v22 }
  0x1d   :  { %1058 = vmatpush3.bf16.msra.mxu0 %v1055_v22  ;;  %1077 = vmatpush3.bf16.msra.mxu1 %v1055_v22 }
  0x1e   :  { %1060 = vmatprep.subr.bf16.mxu0 %v1059_v25  ;;  %1070 = vmatprep.subr.bf16.mxu1 %v1059_v25 }
  0x21   :  { %1062 = vmatpush3.bf16.msra.mxu0 %v1059_v25  ;;  %1078 = vmatpush3.bf16.msra.mxu1 %v1059_v25 }
  0x24   :  { %960 = vmatmul.mubr.f32.vlgmr.msra.gmra.mrb[0].mxu0 %v12_v26  ;;  %996 = vmatmul.mubr.f32.vlgmr.msra.gmra.mrb[0].mxu1 %v36_v27 }
  0x25   :  { %962 = vmatprep.mubr.f32.mxu0 %v13_v28  ;;  %998 = vmatprep.mubr.f32.mxu1 %v37_v29 }
  0x28   :  { %963 = vmatmul.mubr.f32.gmra.mrb[2].mxu0 %v14_v30  ;;  %999 = vmatmul.mubr.f32.gmra.mrb[2].mxu1 %v38_v31 }
  0x29   :  { %965 = vmatprep.mubr.f32.mxu0 %v15_v32  ;;  %1001 = vmatprep.mubr.f32.mxu1 %v39_v33 }
  0x2c   :  { %966 = vmatmul.mubr.f32.gmra.mrb[4].mxu0 %v16_v34  ;;  %1002 = vmatmul.mubr.f32.gmra.mrb[4].mxu1 %v40_v35 }
  0x2d   :  { %968 = vmatprep.mubr.f32.mxu0 %v17_v36  ;;  %1004 = vmatprep.mubr.f32.mxu1 %v41_v37 }
  0x30   :  { %969 = vmatmul.mubr.f32.gmra.mrb[6].mxu0 %v18_v38  ;;  %1005 = vmatmul.mubr.f32.gmra.mrb[6].mxu1 %v42_v39 }
  0x31   :  { %971 = vmatprep.mubr.f32.mxu0 %v19_v40  ;;  %1007 = vmatprep.mubr.f32.mxu1 %v43_v41 }
  0x34   :  { %972 = vmatmul.mubr.f32.gmra.mrb[8].mxu0 %v20_v42  ;;  %1008 = vmatmul.mubr.f32.gmra.mrb[8].mxu1 %v44_v43 }
  0x35   :  { %974 = vmatprep.mubr.f32.mxu0 %v21_v44  ;;  %1010 = vmatprep.mubr.f32.mxu1 %v45_v45 }
  0x38   :  { %975 = vmatmul.mubr.f32.gmra.mrb[10].mxu0 %v22_v46  ;;  %1011 = vmatmul.mubr.f32.gmra.mrb[10].mxu1 %v46_v47 }
  0x39   :  { %977 = vmatprep.mubr.f32.mxu0 %v23_v48  ;;  %1013 = vmatprep.mubr.f32.mxu1 %v47_v49 }
  0x3c   :  { %978 = vmatmul.mubr.f32.gmra.mrb[12].mxu0 %v24_v50  ;;  %1014 = vmatmul.mubr.f32.gmra.mrb[12].mxu1 %v48_v51 }
  0x3d   :  { %980 = vmatprep.mubr.f32.mxu0 %v25_v52  ;;  %1016 = vmatprep.mubr.f32.mxu1 %v49_v53 }
  0x40   :  { %981 = vmatmul.mubr.f32.gmra.mrb[14].mxu0 %v26_v54  ;;  %1017 = vmatmul.mubr.f32.gmra.mrb[14].mxu1 %v50_v55 }
  0x41   :  { %983 = vmatprep.mubr.f32.mxu0 %v27_v56  ;;  %1019 = vmatprep.mubr.f32.mxu1 %v51_v57 }
  0x44   :  { %984 = vmatmul.mubr.f32.gmra.mrb[16].mxu0 %v28_v58  ;;  %1020 = vmatmul.mubr.f32.gmra.mrb[16].mxu1 %v52_v59 }
  0x45   :  { %986 = vmatprep.mubr.f32.mxu0 %v29_v60  ;;  %1022 = vmatprep.mubr.f32.mxu1 %v53_v61 }
  0x48   :  { %987 = vmatmul.mubr.f32.gmra.mrb[18].mxu0 %v30_v62  ;;  %1023 = vmatmul.mubr.f32.gmra.mrb[18].mxu1 %v54_v63 }
  0x49   :  { %989 = vmatprep.mubr.f32.mxu0 %v31_v0  ;;  %1025 = vmatprep.mubr.f32.mxu1 %v55_v1 }
  0x4c   :  { %990 = vmatmul.mubr.f32.gmra.mrb[20].mxu0 %v32_v2  ;;  %1026 = vmatmul.mubr.f32.gmra.mrb[20].mxu1 %v56_v3 }
  0x4d   :  { %992 = vmatprep.mubr.f32.mxu0 %v33_v4  ;;  %1028 = vmatprep.mubr.f32.mxu1 %v57_v5 }
  0x50   :  { %993 = vmatmul.mubr.f32.gmra.mrb[22].mxu0 %v34_v6  ;;  %1029 = vmatmul.mubr.f32.gmra.mrb[22].mxu1 %v58_v7 }
  0xf7   :  { %v961_v8 = vpop.f32.mrb[0].mxu0  ;;  %v997_v9 = vpop.f32.mrb[0].mxu1 }
  0xf8   :  { %v141_v10 = vpop.f32.mrb[1].mxu0  ;;  %v261_v11 = vpop.f32.mrb[1].mxu1 }
  0xf9   :  { %v723_v12 = vpack.c.bf16 %v961_v8, %v141_v10  ;;  %v783_v13 = vpack.c.bf16 %v997_v9, %v261_v11 }
  0xfb   :  { %724 = vst [vmem:[%s1360_s2] sm:$0xff] %v723_v12   ;;  %851 = vst [vmem:[%s1360_s2 + $0x60] sm:$0xff] %v783_v13   ;;  %v964_v14 = vpop.f32.mrb[2].mxu0  ;;  %v1000_v15 = vpop.f32.mrb[2].mxu1 }
  0xfc   :  { %v151_v16 = vpop.f32.mrb[3].mxu0  ;;  %v271_v17 = vpop.f32.mrb[3].mxu1 }
  0xfd   :  { %v728_v18 = vpack.c.bf16 %v964_v14, %v151_v16  ;;  %v788_v19 = vpack.c.bf16 %v1000_v15, %v271_v17 }
  0xff   :  { %840 = vst [vmem:[%s1360_s2 + $0x8] sm:$0xff] %v728_v18   ;;  %852 = vst [vmem:[%s1360_s2 + $0x68] sm:$0xff] %v788_v19   ;;  %v967_v20 = vpop.f32.mrb[4].mxu0  ;;  %v1003_v21 = vpop.f32.mrb[4].mxu1 }
 0x100   :  { %v161_v22 = vpop.f32.mrb[5].mxu0  ;;  %v281_v23 = vpop.f32.mrb[5].mxu1 }
 0x101   :  { %v733_v24 = vpack.c.bf16 %v967_v20, %v161_v22  ;;  %v793_v25 = vpack.c.bf16 %v1003_v21, %v281_v23 }
 0x103   :  { %841 = vst [vmem:[%s1360_s2 + $0x10] sm:$0xff] %v733_v24   ;;  %853 = vst [vmem:[%s1360_s2 + $0x70] sm:$0xff] %v793_v25   ;;  %v970_v26 = vpop.f32.mrb[6].mxu0  ;;  %v1006_v27 = vpop.f32.mrb[6].mxu1 }
 0x104   :  { %v171_v28 = vpop.f32.mrb[7].mxu0  ;;  %v291_v29 = vpop.f32.mrb[7].mxu1 }
 0x105   :  { %v738_v30 = vpack.c.bf16 %v970_v26, %v171_v28  ;;  %v798_v31 = vpack.c.bf16 %v1006_v27, %v291_v29 }
 0x107   :  { %842 = vst [vmem:[%s1360_s2 + $0x18] sm:$0xff] %v738_v30   ;;  %854 = vst [vmem:[%s1360_s2 + $0x78] sm:$0xff] %v798_v31   ;;  %v973_v32 = vpop.f32.mrb[8].mxu0  ;;  %v1009_v33 = vpop.f32.mrb[8].mxu1 }
 0x108   :  { %v181_v34 = vpop.f32.mrb[9].mxu0  ;;  %v301_v35 = vpop.f32.mrb[9].mxu1 }
 0x109   :  { %v743_v36 = vpack.c.bf16 %v973_v32, %v181_v34  ;;  %v803_v37 = vpack.c.bf16 %v1009_v33, %v301_v35 }
 0x10b   :  { %843 = vst [vmem:[%s1360_s2 + $0x20] sm:$0xff] %v743_v36   ;;  %855 = vst [vmem:[%s1360_s2 + $0x80] sm:$0xff] %v803_v37   ;;  %v976_v38 = vpop.f32.mrb[10].mxu0  ;;  %v1012_v39 = vpop.f32.mrb[10].mxu1 }
 0x10c   :  { %v191_v40 = vpop.f32.mrb[11].mxu0  ;;  %v311_v41 = vpop.f32.mrb[11].mxu1 }
 0x10d   :  { %v748_v42 = vpack.c.bf16 %v976_v38, %v191_v40  ;;  %v808_v43 = vpack.c.bf16 %v1012_v39, %v311_v41 }
 0x10f   :  { %844 = vst [vmem:[%s1360_s2 + $0x28] sm:$0xff] %v748_v42   ;;  %856 = vst [vmem:[%s1360_s2 + $0x88] sm:$0xff] %v808_v43   ;;  %v979_v44 = vpop.f32.mrb[12].mxu0  ;;  %v1015_v45 = vpop.f32.mrb[12].mxu1 }
 0x110   :  { %v201_v46 = vpop.f32.mrb[13].mxu0  ;;  %v321_v47 = vpop.f32.mrb[13].mxu1 }
 0x111   :  { %v753_v48 = vpack.c.bf16 %v979_v44, %v201_v46  ;;  %v813_v49 = vpack.c.bf16 %v1015_v45, %v321_v47 }
 0x113   :  { %845 = vst [vmem:[%s1360_s2 + $0x30] sm:$0xff] %v753_v48   ;;  %857 = vst [vmem:[%s1360_s2 + $0x90] sm:$0xff] %v813_v49   ;;  %v982_v50 = vpop.f32.mrb[14].mxu0  ;;  %v1018_v51 = vpop.f32.mrb[14].mxu1 }
 0x114   :  { %v211_v52 = vpop.f32.mrb[15].mxu0  ;;  %v331_v53 = vpop.f32.mrb[15].mxu1 }
 0x115   :  { %v758_v54 = vpack.c.bf16 %v982_v50, %v211_v52  ;;  %v818_v55 = vpack.c.bf16 %v1018_v51, %v331_v53 }
 0x117   :  { %846 = vst [vmem:[%s1360_s2 + $0x38] sm:$0xff] %v758_v54   ;;  %858 = vst [vmem:[%s1360_s2 + $0x98] sm:$0xff] %v818_v55   ;;  %v985_v56 = vpop.f32.mrb[16].mxu0  ;;  %v1021_v57 = vpop.f32.mrb[16].mxu1 }
 0x118   :  { %v221_v58 = vpop.f32.mrb[17].mxu0  ;;  %v341_v59 = vpop.f32.mrb[17].mxu1 }
 0x119   :  { %v763_v60 = vpack.c.bf16 %v985_v56, %v221_v58  ;;  %v823_v61 = vpack.c.bf16 %v1021_v57, %v341_v59 }
 0x11b   :  { %847 = vst [vmem:[%s1360_s2 + $0x40] sm:$0xff] %v763_v60   ;;  %859 = vst [vmem:[%s1360_s2 + $0xa0] sm:$0xff] %v823_v61   ;;  %v988_v62 = vpop.f32.mrb[18].mxu0  ;;  %v1024_v63 = vpop.f32.mrb[18].mxu1 }
 0x11c   :  { %v231_v0 = vpop.f32.mrb[19].mxu0  ;;  %v351_v1 = vpop.f32.mrb[19].mxu1 }
 0x11d   :  { %v768_v2 = vpack.c.bf16 %v988_v62, %v231_v0  ;;  %v828_v3 = vpack.c.bf16 %v1024_v63, %v351_v1 }
 0x11f   :  { %848 = vst [vmem:[%s1360_s2 + $0x48] sm:$0xff] %v768_v2   ;;  %860 = vst [vmem:[%s1360_s2 + $0xa8] sm:$0xff] %v828_v3   ;;  %v991_v4 = vpop.f32.mrb[20].mxu0  ;;  %v1027_v5 = vpop.f32.mrb[20].mxu1 }
 0x120   :  { %v241_v6 = vpop.f32.mrb[21].mxu0  ;;  %v361_v7 = vpop.f32.mrb[21].mxu1 }
 0x121   :  { %v773_v8 = vpack.c.bf16 %v991_v4, %v241_v6  ;;  %v833_v9 = vpack.c.bf16 %v1027_v5, %v361_v7 }
 0x123   :  { %849 = vst [vmem:[%s1360_s2 + $0x50] sm:$0xff] %v773_v8   ;;  %861 = vst [vmem:[%s1360_s2 + $0xb0] sm:$0xff] %v833_v9   ;;  %v994_v10 = vpop.f32.mrb[22].mxu0  ;;  %v1030_v11 = vpop.f32.mrb[22].mxu1 }
 0x124   :  { %v251_v12 = vpop.f32.mrb[23].mxu0  ;;  %v371_v13 = vpop.f32.mrb[23].mxu1 }
 0x125   :  { %v778_v14 = vpack.c.bf16 %v994_v10, %v251_v12  ;;  %v838_v15 = vpack.c.bf16 %v1030_v11, %v371_v13 }
 0x127   :  { %850 = vst [vmem:[%s1360_s2 + $0x58] sm:$0xff] %v778_v14   ;;  %862 = vst [vmem:[%s1360_s2 + $0xb8] sm:$0xff] %v838_v15  }

// kernel: graph_convolution.3
= control target key start
LH: loop header
LB: loop body
LE: loop exit
PB: predicated region body
PF: predicated region fallthrough
CT: control target
= control target key end

     0   :  { %s1202_s12 = smov 0   ;;  %s1204_s13 = smov 0   ;;  %s1379_s0 = inlined_call_operand.vmem [shape: bf16[384,384], index: 0, kind: input, shape index: {}]   ;;  %s1380_s1 = inlined_call_operand.vmem [shape: bf16[384,128], index: 1, kind: input, shape index: {}]   ;;  %s1381_s2 = inlined_call_operand.vmem [shape: f32[1,128], index: 2, kind: input, shape index: {}]   ;;  %s1382_s3 = inlined_call_operand.vmem [shape: f32[384,128], index: 3, kind: output, shape index: {}]  }
   0x1   :  { %s1206_s14 = smov 0  }
   0x2 LB: > { %s25_s15 = sadd.s32 1, %s1176_s13  ;;  %p909_p0 = scmp.ge.s32.totalorder %s1180_s14, 1  ;;  %s1180_s14 = sphi %s1206_s14, %s13_s14   ;;  %s1176_s13 = sphi %s1204_s13, %s1384_s13   ;;  %s1172_s12 = sphi %s1202_s12, %s1383_s12  }
   0x3   : > { %p27_p1 = scmp.ge.s32.totalorder %s25_s15, 3  ;;  %p158_p2 = scmp.lt.s32.totalorder %s1180_s14, 4 }
   0x5   : > { %s1386_s15 = smov (%p27_p1, %s25_s15), 0  ;;  %p159_p3 = pnand %p909_p0, %p158_p2 }
   0x6   : > { %v1102_v0 = vld [vmem:[%s1380_s1 + $0x40] sm:$0xff] (!%p159_p3)   ;;  %v1105_v3 = vld [vmem:[%s1380_s1 + $0x48] sm:$0xff] (!%p159_p3)   ;;  %v1108_v6 = vld [vmem:[%s1380_s1 + $0x50] sm:$0xff] (!%p159_p3)   ;;  %s910_s5 = sshll.u32 (!%p159_p3), %s1172_s12, 4 }
   0x7   : > { %162 = sbr.rel (%p159_p3) target bundleno = 317 (0x13d), region = 32  ;;  %v1103_v1 = vld [vmem:[%s1380_s1] sm:$0xff] (!%p159_p3)   ;;  %965 = vmatprep.subr.bf16.mxu0 (!%p159_p3), %v1102_v0  ;;  %v1106_v4 = vld [vmem:[%s1380_s1 + $0x8] sm:$0xff] (!%p159_p3)   ;;  %v1109_v7 = vld [vmem:[%s1380_s1 + $0x10] sm:$0xff] (!%p159_p3)   ;;  %p189_p4 = scmp.lt.s32.totalorder (!%p159_p3), %s910_s5, 47 }
   0x8   : > { %v1104_v2 = vld [vmem:[%s1380_s1 + $0x80] sm:$0xff] (!%p159_p3)   ;;  %966 = vmatpush3.bf16.msra.mxu0 (!%p159_p3), %v1103_v1  ;;  %v1107_v5 = vld [vmem:[%s1380_s1 + $0x88] sm:$0xff] (!%p159_p3)   ;;  %v1110_v8 = vld [vmem:[%s1380_s1 + $0x90] sm:$0xff] (!%p159_p3)  }
   0x9   : > { %1045 = vmatprep.subr.bf16.mxu1 (!%p159_p3), %v1104_v2  ;;  %967 = vmatprep.subr.bf16.mxu0 (!%p159_p3), %v1105_v3  ;;  %v1111_v9 = vld [vmem:[%s1380_s1 + $0x58] sm:$0xff] (!%p159_p3)   ;;  %v1114_v12 = vld [vmem:[%s1380_s1 + $0x60] sm:$0xff] (!%p159_p3)   ;;  %v1117_v15 = vld [vmem:[%s1380_s1 + $0x68] sm:$0xff] (!%p159_p3)  }
   0xa   : > { %1046 = vmatpush3.bf16.msra.mxu1 (!%p159_p3), %v1104_v2  ;;  %v1112_v10 = vld [vmem:[%s1380_s1 + $0x18] sm:$0xff] (!%p159_p3)   ;;  %v1116_v13 = vld [vmem:[%s1380_s1 + $0xa0] sm:$0xff] (!%p159_p3)   ;;  %v1119_v16 = vld [vmem:[%s1380_s1 + $0xa8] sm:$0xff] (!%p159_p3)  }
   0xb   : > { %1047 = vmatprep.subr.bf16.mxu1 (!%p159_p3), %v1107_v5  ;;  %v1113_v11 = vld [vmem:[%s1380_s1 + $0x98] sm:$0xff] (!%p159_p3)   ;;  %v1115_v14 = vld [vmem:[%s1380_s1 + $0x20] sm:$0xff] (!%p159_p3)   ;;  %v1118_v17 = vld [vmem:[%s1380_s1 + $0x28] sm:$0xff] (!%p159_p3)  }
   0xc   : > { %968 = vmatpush3.bf16.msra.mxu0 (!%p159_p3), %v1106_v4  ;;  %v1120_v18 = vld [vmem:[%s1380_s1 + $0x70] sm:$0xff] (!%p159_p3)   ;;  %v1123_v21 = vld [vmem:[%s1380_s1 + $0x78] sm:$0xff] (!%p159_p3)   ;;  %v1331_v54 = vld [vmem:[%s1381_s2] ss:$0 sm:$0xff] (!%p159_p3) }
   0xd   : > { %969 = vmatprep.subr.bf16.mxu0 (!%p159_p3), %v1108_v6  ;;  %v1121_v19 = vld [vmem:[%s1380_s1 + $0x30] sm:$0xff] (!%p159_p3)   ;;  %v1125_v22 = vld [vmem:[%s1380_s1 + $0xb8] sm:$0xff] (!%p159_p3)  }
   0xe   : > { %1048 = vmatpush3.bf16.msra.mxu1 %v1107_v5  ;;  %s1388_s5 = smov (!%p189_p4, %s910_s5), 47  ;;  %v1122_v20 = vld [vmem:[%s1380_s1 + $0xb0] sm:$0xff]   ;;  %v1124_v25 = vld [vmem:[%s1380_s1 + $0x38] sm:$0xff]  }
   0xf   : > { %1049 = vmatprep.subr.bf16.mxu1 %v1110_v8  ;;  %s1077_s27 = smul.u32 12, %s1388_s5  ;;  %s913_s22 = sshll.u32 %s1388_s5, 3 }
  0x10   : > { %970 = vmatpush3.bf16.msra.mxu0 %v1109_v7 }
  0x11   : > { %971 = vmatprep.subr.bf16.mxu0 %v1111_v9  ;;  %s1292_s16 = scalar_lea.vmem %s1379_s0, %s1077_s27  ;;  %s1336_s27 = scalar_lea.vmem %s1382_s3, %s913_s22 }
  0x12   : > { %1050 = vmatpush3.bf16.msra.mxu1 %v1110_v8  ;;  %v1128_v23 = vld [vmem:[%s1292_s16 + $0x4] ss:$12 sps:$4 sm:$0xff]   ;;  %v1129_v24 = vld [vmem:[%s1292_s16 + $0x8] ss:$12 sps:$4 sm:$0xff]   ;;  %v1126_v26 = vld [vmem:[%s1292_s16] ss:$12 sps:$4 sm:$0xff]  }
  0x13   : > { %1051 = vmatprep.subr.bf16.mxu1 %v1113_v11  ;;  %638 = vmatprep.mubr.bf16.mxu0 %v1128_v23  ;;  %v1131_v27 = vld [vmem:[%s1292_s16 + $0x1c] ss:$12 sps:$4 sm:$0xff]   ;;  %v1130_v28 = vld [vmem:[%s1292_s16 + $0x20] ss:$12 sps:$4 sm:$0xff]   ;;  %v1137_v29 = vld [vmem:[%s1292_s16 + $0x38] ss:$12 sps:$4 sm:$0xff]  }
  0x14   : > { %972 = vmatpush3.bf16.msra.mxu0 %v1112_v10  ;;  %1061 = vmatprep.mubr.bf16.mxu1 %v1129_v24  ;;  %v1133_v30 = vld [vmem:[%s1292_s16 + $0x18] ss:$12 sps:$4 sm:$0xff]   ;;  %v1134_v31 = vld [vmem:[%s1292_s16 + $0x34] ss:$12 sps:$4 sm:$0xff]   ;;  %v1138_v32 = vld [vmem:[%s1292_s16 + $0x50] ss:$12 sps:$4 sm:$0xff]  }
  0x15   : > { %973 = vmatprep.subr.bf16.mxu0 %v1114_v12  ;;  %v1145_v33 = vld [vmem:[%s1292_s16 + $0x68] ss:$12 sps:$4 sm:$0xff]   ;;  %v1136_v34 = vld [vmem:[%s1292_s16 + $0x30] ss:$12 sps:$4 sm:$0xff]   ;;  %v1139_v35 = vld [vmem:[%s1292_s16 + $0x4c] ss:$12 sps:$4 sm:$0xff]  }
  0x16   : > { %1052 = vmatpush3.bf16.msra.mxu1 %v1113_v11  ;;  %v1146_v36 = vld [vmem:[%s1292_s16 + $0x80] ss:$12 sps:$4 sm:$0xff]   ;;  %v1153_v37 = vld [vmem:[%s1292_s16 + $0x98] ss:$12 sps:$4 sm:$0xff]   ;;  %v1141_v38 = vld [vmem:[%s1292_s16 + $0x48] ss:$12 sps:$4 sm:$0xff]  }
  0x17   : > { %1053 = vmatprep.subr.bf16.mxu1 %v1116_v13  ;;  %v1142_v39 = vld [vmem:[%s1292_s16 + $0x64] ss:$12 sps:$4 sm:$0xff]   ;;  %v1144_v41 = vld [vmem:[%s1292_s16 + $0x60] ss:$12 sps:$4 sm:$0xff]   ;;  %v1147_v42 = vld [vmem:[%s1292_s16 + $0x7c] ss:$12 sps:$4 sm:$0xff]  }
  0x18   : > { %974 = vmatpush3.bf16.msra.mxu0 %v1115_v14  ;;  %v1154_v40 = vld [vmem:[%s1292_s16 + $0xb0] ss:$12 sps:$4 sm:$0xff]   ;;  %v1149_v43 = vld [vmem:[%s1292_s16 + $0x78] ss:$12 sps:$4 sm:$0xff]   ;;  %v1150_v44 = vld [vmem:[%s1292_s16 + $0x94] ss:$12 sps:$4 sm:$0xff]  }
  0x19   : > { %975 = vmatprep.subr.bf16.mxu0 %v1117_v15  ;;  %v1152_v45 = vld [vmem:[%s1292_s16 + $0x90] ss:$12 sps:$4 sm:$0xff]   ;;  %v1155_v46 = vld [vmem:[%s1292_s16 + $0xac] ss:$12 sps:$4 sm:$0xff]   ;;  %v1157_v47 = vld [vmem:[%s1292_s16 + $0xa8] ss:$12 sps:$4 sm:$0xff]  }
  0x1a   : > { %1054 = vmatpush3.bf16.msra.mxu1 %v1116_v13 }
  0x1b   : > { %1055 = vmatprep.subr.bf16.mxu1 %v1119_v16 }
  0x1c   : > { %976 = vmatpush3.bf16.msra.mxu0 %v1118_v17 }
  0x1d   : > { %977 = vmatprep.subr.bf16.mxu0 %v1120_v18 }
  0x1e   : > { %1056 = vmatpush3.bf16.msra.mxu1 %v1119_v16 }
  0x1f   : > { %1057 = vmatprep.subr.bf16.mxu1 %v1122_v20 }
  0x20   : > { %978 = vmatpush3.bf16.msra.mxu0 %v1121_v19 }
  0x21   : > { %979 = vmatprep.subr.bf16.mxu0 %v1123_v21 }
  0x22   : > { %1058 = vmatpush3.bf16.msra.mxu1 %v1122_v20 }
  0x23   : > { %1059 = vmatprep.subr.bf16.mxu1 %v1125_v22 }
  0x24   : > { %980 = vmatpush3.bf16.msra.mxu0 %v1124_v25 }
  0x26   : > { %1060 = vmatpush3.bf16.msra.mxu1 %v1125_v22 }
  0x27   : > { %639 = vmatmul.mubr.bf16.vlgmr.msra.gmra.mrb[0].mxu0 %v1126_v26 }
  0x28   : > { %646 = vmatprep.mubr.bf16.mxu0 %v1131_v27 }
  0x29   : > { %1062 = vmatmul.mubr.bf16.vlgmr.msra.gmra.mrb[0].mxu1 %v1130_v28 }
  0x2a   : > { %1065 = vmatprep.mubr.bf16.mxu1 %v1137_v29 }
  0x2f   : > { %647 = vmatmul.mubr.bf16.gmra.mrb[4].mxu0 %v1133_v30 }
  0x30   : > { %654 = vmatprep.mubr.bf16.mxu0 %v1134_v31 }
  0x31   : > { %1066 = vmatmul.mubr.bf16.gmra.mrb[4].mxu1 %v1138_v32 }
  0x32   : > { %1069 = vmatprep.mubr.bf16.mxu1 %v1145_v33 }
  0x37   : > { %655 = vmatmul.mubr.bf16.gmra.mrb[8].mxu0 %v1136_v34 }
  0x38   : > { %662 = vmatprep.mubr.bf16.mxu0 %v1139_v35 }
  0x39   : > { %1070 = vmatmul.mubr.bf16.gmra.mrb[8].mxu1 %v1146_v36 }
  0x3a   : > { %1073 = vmatprep.mubr.bf16.mxu1 %v1153_v37 }
  0x3f   : > { %663 = vmatmul.mubr.bf16.gmra.mrb[12].mxu0 %v1141_v38 }
  0x40   : > { %670 = vmatprep.mubr.bf16.mxu0 %v1142_v39 }
  0x41   : > { %1074 = vmatmul.mubr.bf16.gmra.mrb[12].mxu1 %v1154_v40 }
  0x47   : > { %671 = vmatmul.mubr.bf16.gmra.mrb[16].mxu0 %v1144_v41 }
  0x48   : > { %678 = vmatprep.mubr.bf16.mxu0 %v1147_v42 }
  0x4f   : > { %679 = vmatmul.mubr.bf16.gmra.mrb[20].mxu0 %v1149_v43 }
  0x50   : > { %686 = vmatprep.mubr.bf16.mxu0 %v1150_v44 }
  0x57   : > { %687 = vmatmul.mubr.bf16.gmra.mrb[24].mxu0 %v1152_v45 }
  0x58   : > { %694 = vmatprep.mubr.bf16.mxu0 %v1155_v46 }
  0x5f   : > { %695 = vmatmul.mubr.bf16.gmra.mrb[28].mxu0 %v1157_v47 }
  0xfa   : > { %v981_v48 = vpop.f32.mrb[0].mxu0 }
  0xfb   : > { %v982_v49 = vpop.f32.mrb[1].mxu0 }
  0xfc   : > { %v983_v50 = vadd.f32 %v982_v49, %v981_v48  ;;  %v984_v51 = vpop.f32.mrb[2].mxu0  ;;  %v1063_v52 = vpop.f32.mrb[0].mxu1 }
  0xfd   : > { %v985_v53 = vpop.f32.mrb[3].mxu0  ;;  %v737_v55 = vpop.f32.mrb[1].mxu1 }
  0xfe   : > { %v986_v56 = vadd.f32 %v985_v53, %v984_v51  ;;  %v738_v57 = vadd.f32 %v983_v50, %v737_v55  ;;  %v1064_v58 = vpop.f32.mrb[2].mxu1 }
  0xff   : > { %v740_v59 = vpop.f32.mrb[3].mxu1 }
 0x100   : > { %v800_v60 = vadd.f32 %v1331_v54, %v738_v57  ;;  %v741_v61 = vadd.f32 %v986_v56, %v740_v59 }
 0x102   : > { %816 = vst [vmem:[%s1336_s27] sm:$0xff] %v800_v60  ;;  %v801_v62 = vadd.f32 %v1331_v54, %v741_v61  ;;  %v987_v63 = vpop.f32.mrb[4].mxu0 }
 0x103   : > { %v988_v0 = vpop.f32.mrb[5].mxu0 }
 0x104   : > { %817 = vst [vmem:[%s1336_s27 + $0x8] sm:$0xff] %v801_v62  ;;  %v989_v1 = vadd.f32 %v988_v0, %v987_v63  ;;  %v990_v2 = vpop.f32.mrb[6].mxu0  ;;  %v1067_v3 = vpop.f32.mrb[4].mxu1 }
 0x105   : > { %v991_v4 = vpop.f32.mrb[7].mxu0  ;;  %v753_v5 = vpop.f32.mrb[5].mxu1 }
 0x106   : > { %v746_v6 = vadd.f32 %v1063_v52, %v989_v1  ;;  %v992_v7 = vadd.f32 %v991_v4, %v990_v2  ;;  %v1068_v8 = vpop.f32.mrb[6].mxu1 }
 0x107   : > { %v756_v9 = vpop.f32.mrb[7].mxu1 }
 0x108   : > { %v802_v10 = vadd.f32 %v1331_v54, %v746_v6  ;;  %v749_v11 = vadd.f32 %v1064_v58, %v992_v7 }
 0x10a   : > { %818 = vst [vmem:[%s1336_s27 + $0x10] sm:$0xff] %v802_v10  ;;  %v803_v12 = vadd.f32 %v1331_v54, %v749_v11  ;;  %v993_v13 = vpop.f32.mrb[8].mxu0 }
 0x10b   : > { %v994_v14 = vpop.f32.mrb[9].mxu0 }
 0x10c   : > { %819 = vst [vmem:[%s1336_s27 + $0x18] sm:$0xff] %v803_v12  ;;  %v995_v15 = vadd.f32 %v994_v14, %v993_v13  ;;  %v996_v16 = vpop.f32.mrb[10].mxu0  ;;  %v1071_v17 = vpop.f32.mrb[8].mxu1 }
 0x10d   : > { %v997_v18 = vpop.f32.mrb[11].mxu0  ;;  %v769_v19 = vpop.f32.mrb[9].mxu1 }
 0x10e   : > { %v998_v20 = vadd.f32 %v997_v18, %v996_v16  ;;  %v754_v21 = vadd.f32 %v995_v15, %v753_v5  ;;  %v1072_v22 = vpop.f32.mrb[10].mxu1 }
 0x10f   : > { %v772_v23 = vpop.f32.mrb[11].mxu1 }
 0x110   : > { %v804_v24 = vadd.f32 %v1331_v54, %v754_v21  ;;  %v757_v25 = vadd.f32 %v998_v20, %v756_v9 }
 0x112   : > { %820 = vst [vmem:[%s1336_s27 + $0x20] sm:$0xff] %v804_v24  ;;  %v805_v26 = vadd.f32 %v1331_v54, %v757_v25  ;;  %v999_v27 = vpop.f32.mrb[12].mxu0 }
 0x113   : > { %v1000_v28 = vpop.f32.mrb[13].mxu0 }
 0x114   : > { %821 = vst [vmem:[%s1336_s27 + $0x28] sm:$0xff] %v805_v26  ;;  %v1001_v29 = vadd.f32 %v1000_v28, %v999_v27  ;;  %v1002_v30 = vpop.f32.mrb[14].mxu0  ;;  %v1075_v31 = vpop.f32.mrb[12].mxu1 }
 0x115   : > { %v1003_v32 = vpop.f32.mrb[15].mxu0  ;;  %v785_v33 = vpop.f32.mrb[13].mxu1 }
 0x116   : > { %v762_v34 = vadd.f32 %v1067_v3, %v1001_v29  ;;  %v1004_v35 = vadd.f32 %v1003_v32, %v1002_v30  ;;  %v1076_v36 = vpop.f32.mrb[14].mxu1 }
 0x117   : > { %v788_v37 = vpop.f32.mrb[15].mxu1 }
 0x118   : > { %v806_v38 = vadd.f32 %v1331_v54, %v762_v34  ;;  %v765_v39 = vadd.f32 %v1068_v8, %v1004_v35 }
 0x11a   : > { %822 = vst [vmem:[%s1336_s27 + $0x30] sm:$0xff] %v806_v38  ;;  %v807_v40 = vadd.f32 %v1331_v54, %v765_v39  ;;  %v1005_v41 = vpop.f32.mrb[16].mxu0 }
 0x11b   : > { %v1006_v42 = vpop.f32.mrb[17].mxu0 }
 0x11c   : > { %823 = vst [vmem:[%s1336_s27 + $0x38] sm:$0xff] %v807_v40  ;;  %v1007_v43 = vadd.f32 %v1006_v42, %v1005_v41  ;;  %v1008_v44 = vpop.f32.mrb[18].mxu0 }
 0x11d   : > { %v1009_v45 = vpop.f32.mrb[19].mxu0 }
 0x11e   : > { %v1010_v46 = vadd.f32 %v1009_v45, %v1008_v44  ;;  %v770_v47 = vadd.f32 %v1007_v43, %v769_v19 }
 0x120   : > { %v808_v48 = vadd.f32 %v1331_v54, %v770_v47  ;;  %v773_v49 = vadd.f32 %v1010_v46, %v772_v23 }
 0x122   : > { %824 = vst [vmem:[%s1336_s27 + $0x40] sm:$0xff] %v808_v48  ;;  %v809_v50 = vadd.f32 %v1331_v54, %v773_v49  ;;  %v1011_v51 = vpop.f32.mrb[20].mxu0 }
 0x123   : > { %v1012_v52 = vpop.f32.mrb[21].mxu0 }
 0x124   : > { %825 = vst [vmem:[%s1336_s27 + $0x48] sm:$0xff] %v809_v50  ;;  %v1013_v53 = vadd.f32 %v1012_v52, %v1011_v51  ;;  %v1014_v55 = vpop.f32.mrb[22].mxu0 }
 0x125   : > { %v1015_v56 = vpop.f32.mrb[23].mxu0 }
 0x126   : > { %v778_v57 = vadd.f32 %v1071_v17, %v1013_v53  ;;  %v1016_v58 = vadd.f32 %v1015_v56, %v1014_v55 }
 0x128   : > { %v810_v59 = vadd.f32 %v1331_v54, %v778_v57  ;;  %v781_v60 = vadd.f32 %v1072_v22, %v1016_v58 }
 0x12a   : > { %826 = vst [vmem:[%s1336_s27 + $0x50] sm:$0xff] %v810_v59  ;;  %v811_v61 = vadd.f32 %v1331_v54, %v781_v60  ;;  %v1017_v62 = vpop.f32.mrb[24].mxu0 }
 0x12b   : > { %v1018_v63 = vpop.f32.mrb[25].mxu0 }
 0x12c   : > { %827 = vst [vmem:[%s1336_s27 + $0x58] sm:$0xff] %v811_v61  ;;  %v1019_v0 = vadd.f32 %v1018_v63, %v1017_v62  ;;  %v1020_v1 = vpop.f32.mrb[26].mxu0 }
 0x12d   : > { %v1021_v2 = vpop.f32.mrb[27].mxu0 }
 0x12e   : > { %v1022_v3 = vadd.f32 %v1021_v2, %v1020_v1  ;;  %v786_v4 = vadd.f32 %v1019_v0, %v785_v33 }
 0x130   : > { %v812_v5 = vadd.f32 %v1331_v54, %v786_v4  ;;  %v789_v6 = vadd.f32 %v1022_v3, %v788_v37 }
 0x132   : > { %828 = vst [vmem:[%s1336_s27 + $0x60] sm:$0xff] %v812_v5  ;;  %v813_v7 = vadd.f32 %v1331_v54, %v789_v6  ;;  %v1023_v8 = vpop.f32.mrb[28].mxu0 }
 0x133   : > { %v1024_v9 = vpop.f32.mrb[29].mxu0 }
 0x134   : > { %829 = vst [vmem:[%s1336_s27 + $0x68] sm:$0xff] %v813_v7  ;;  %v1025_v10 = vadd.f32 %v1024_v9, %v1023_v8  ;;  %v1026_v11 = vpop.f32.mrb[30].mxu0 }
 0x135   : > { %v1027_v12 = vpop.f32.mrb[31].mxu0 }
 0x136   : > { %v794_v13 = vadd.f32 %v1075_v31, %v1025_v10  ;;  %v1028_v14 = vadd.f32 %v1027_v12, %v1026_v11 }
 0x138   : > { %v814_v15 = vadd.f32 %v1331_v54, %v794_v13  ;;  %v797_v16 = vadd.f32 %v1076_v36, %v1028_v14 }
 0x13a   : > { %830 = vst [vmem:[%s1336_s27 + $0x70] sm:$0xff] %v814_v15  ;;  %v815_v17 = vadd.f32 %v1331_v54, %v797_v16 }
 0x13c   : > { %831 = vst [vmem:[%s1336_s27 + $0x78] sm:$0xff] %v815_v17 }
 0x13d PF: > { %s13_s14 = sadd.s32 1, %s1180_s14   ;;  %s1383_s12 = smov %s1176_s13 }
 0x13e   : > { %p10_p5 = scmp.ge.s32.totalorder %s13_s14, 5   ;;  %s1384_s13 = smov %s1386_s15 }
 0x140   :  { %12 = sbr.rel (!%p10_p5) target bundleno = 2 (0x2), region = 67 }

</bundles_post_ra>
